<compile_context>
chip_gen: v5e
topology: v5e:2x2
jax: 0.10.0
libtpu: 0.0.40
codegen_flags: <defaults>
</compile_context>

<pallas_src>
import functools
import math

import jax
import jax.numpy as jnp
from jax.experimental import pallas as pl
from jax.experimental.pallas import tpu as pltpu


def _round_up(x, m):
    return ((x + m - 1) // m) * m


def _vmem_capacity_bytes():
    """Physical VMEM of the local TPU generation (conservative fallback)."""
    try:
        return int(pltpu.get_tpu_info().vmem_capacity_bytes)
    except Exception:
        return 64 * 1024 * 1024  # v7x-sized fallback: safe on every generation.


def _pick_cout_tile(cout):
    """Output-channel tile: keep the resident weight block small for big Cout."""
    if cout > 256 and cout % 256 == 0:
        return 256
    if cout > 256 and cout % 128 == 0:
        return 128
    return cout


def _conv1x1_mxu_kernel(x_ref, w_ref, b_ref, o_ref):
    # x_ref: (1, Cin, ts)  w_ref: (tco, Cin)  b_ref: (tco, 1)  o_ref: (1, tco, ts)
    # Operands stay in their native dtype (bf16 stays bf16); accumulate in f32.
    acc = jnp.dot(w_ref[...], x_ref[0], preferred_element_type=jnp.float32)
    acc = acc + b_ref[...].astype(jnp.float32)
    o_ref[0] = acc.astype(o_ref.dtype)


def _conv1x1_vpu_kernel(x_ref, w_ref, b_ref, o_ref, *, cin):
    # Tiny-channel fallback (cin < 8): short unrolled VPU multiply-add over Cin.
    x = x_ref[0].astype(jnp.float32)               # (Cin, ts)
    w = w_ref[...].astype(jnp.float32)             # (tco, Cin)
    acc = w[:, 0:1] * x[0:1, :]                    # (tco, ts)
    for ic in range(1, cin):
        acc = acc + w[:, ic:ic + 1] * x[ic:ic + 1, :]
    o_ref[0] = (acc + b_ref[...].astype(jnp.float32)).astype(o_ref.dtype)


def conv1x1_pallas(x_nchw, weight, bias, *, tile_hw=8192):
    """1x1 Conv2d forward (NCHW in / NCHW out, PyTorch conventions).

    Args:
      x_nchw: (N, Cin, H, W) input.
      weight: (Cout, Cin, 1, 1) conv weight.
      bias:   (Cout,) bias.
      tile_hw: upper bound on the spatial (lane) tile; the actual tile is
               VMEM-budget-derived and a multiple of 128.
    Returns:
      (N, Cout, H, W) output.
    """
    N, Cin, H, W = x_nchw.shape
    Cout = weight.shape[0]
    HW = H * W

    # NCHW-native: these reshapes are free (no data movement / transposes).
    x_flat = x_nchw.reshape(N, Cin, HW)            # (N, Cin, HW)
    w_mat = weight.reshape(Cout, Cin)              # (Cout, Cin)
    b_mat = bias.reshape(Cout, 1)                  # (Cout, 1)

    x_item = jnp.dtype(x_nchw.dtype).itemsize
    w_item = jnp.dtype(weight.dtype).itemsize

    tco = _pick_cout_tile(Cout)
    use_mxu = Cin >= 8

    # ---- VMEM-budget-driven spatial tile -----------------------------------
    cap = _vmem_capacity_bytes()
    vmem_limit = min(int(cap * 0.75), cap - (4 << 20))
    budget = int(cap * 0.45)                       # budget for pipelined buffers
    fixed = 2 * tco * Cin * w_item + 2 * tco * w_item      # weight + bias (x2 bufs)
    per_lane = 2 * (Cin * x_item + tco * x_item)           # x + out blocks (x2 bufs)
    avail = max(budget - fixed - (2 << 20), per_lane * 128)
    ts_budget = max(128, (avail // per_lane) // 128 * 128)
    ts_max = max(128, min(_round_up(tile_hw, 128), ts_budget))

    # Pad spatial only to a 128-lane multiple, then split it into balanced
    # 128-multiple tiles of at most ts_max lanes (padding waste stays tiny
    # instead of growing with the tile size).
    HW128 = _round_up(HW, 128)
    m128 = HW128 // 128
    n_hw = pl.cdiv(m128, ts_max // 128)
    ts = pl.cdiv(m128, n_hw) * 128
    HW_pad = n_hw * ts
    if HW_pad != HW:
        x_flat = jnp.pad(x_flat, ((0, 0), (0, 0), (0, HW_pad - HW)))

    n_co = Cout // tco
    grid = (N, n_co, n_hw)

    kernel = (_conv1x1_mxu_kernel if use_mxu
              else functools.partial(_conv1x1_vpu_kernel, cin=Cin))

    cost = pl.CostEstimate(
        flops=2 * N * Cout * Cin * HW,
        transcendentals=0,
        bytes_accessed=(N * Cin * HW_pad * x_item
                        + Cout * (Cin + 1) * w_item
                        + N * Cout * HW_pad * x_item),
    )

    out = pl.pallas_call(
        kernel,
        out_shape=jax.ShapeDtypeStruct((N, Cout, HW_pad), x_nchw.dtype),
        grid_spec=pltpu.PrefetchScalarGridSpec(
            num_scalar_prefetch=0,
            grid=grid,
            in_specs=[
                # One image, all input channels, one spatial tile.
                pl.BlockSpec((1, Cin, ts), lambda n, co, j: (n, 0, j)),
                # One output-channel tile of the weight / bias.
                pl.BlockSpec((tco, Cin), lambda n, co, j: (co, 0)),
                pl.BlockSpec((tco, 1), lambda n, co, j: (co, 0)),
            ],
            out_specs=pl.BlockSpec((1, tco, ts), lambda n, co, j: (n, co, j)),
        ),
        compiler_params=pltpu.CompilerParams(
            dimension_semantics=("parallel", "parallel", "parallel"),
            vmem_limit_bytes=vmem_limit,
        ),
        cost_estimate=cost,
    )(x_flat, w_mat, b_mat)

    if HW_pad != HW:
        out = out[:, :, :HW]
    return out.reshape(N, Cout, H, W)


def init_params(key, inC, outC, dtype=jnp.float32):
    """Deterministic init matching nn.Conv2d default (uniform +/- 1/sqrt(fan_in))."""
    k_w, k_b = jax.random.split(key)
    fan_in = inC * 1 * 1
    bound = 1.0 / math.sqrt(fan_in)
    weight = jax.random.uniform(k_w, (outC, inC, 1, 1), dtype,
                                minval=-bound, maxval=bound)
    bias = jax.random.uniform(k_b, (outC,), dtype, minval=-bound, maxval=bound)
    return weight, bias


def _reference(x, weight, bias):
    outC, inC = weight.shape[0], weight.shape[1]
    return (jnp.einsum("nchw,oc->nohw", x, weight.reshape(outC, inC))
            + bias.reshape(1, outC, 1, 1))


if __name__ == "__main__":
    key = jax.random.PRNGKey(0)
    k_x, k_p, k_x2, k_p2 = jax.random.split(key, 4)

    # Small demo shape (tiny-channel / VPU path): matches the module spirit.
    N, inC, H, W = 2, 4, 16, 16
    outC = 8
    x = jax.random.normal(k_x, (N, inC, H, W), jnp.float32)
    weight, bias = init_params(k_p, inC, outC)

    y = conv1x1_pallas(x, weight, bias)
    y = jax.block_until_ready(y)
    assert y.shape == (N, outC, H, W)
    assert jnp.allclose(y, _reference(x, weight, bias), atol=1e-4, rtol=1e-4)

    # Second small check exercising the MXU (Cin >= 8) path.
    inC2, outC2 = 32, 16
    x2 = jax.random.normal(k_x2, (N, inC2, H, W), jnp.float32)
    weight2, bias2 = init_params(k_p2, inC2, outC2)
    y2 = conv1x1_pallas(x2, weight2, bias2)
    y2 = jax.block_until_ready(y2)
    assert y2.shape == (N, outC2, H, W)
    assert jnp.allclose(y2, _reference(x2, weight2, bias2), atol=1e-4, rtol=1e-4)

    print("KERNEL_OK")
</pallas_src>

<mosaic_0001>
module attributes {stable_mosaic.version = 11 : i64} {
  func.func @_conv1x1_vpu_kernel(%arg0: i32, %arg1: i32, %arg2: i32, %arg3: memref<1x4x256xf32, #tpu.memory_space<vmem>>, %arg4: memref<8x4xf32, #tpu.memory_space<vmem>>, %arg5: memref<8x1xf32, #tpu.memory_space<vmem>>, %arg6: memref<1x8x256xf32, #tpu.memory_space<vmem>>) attributes {dimension_semantics = [#tpu.dimension_semantics<parallel>, #tpu.dimension_semantics<parallel>, #tpu.dimension_semantics<parallel>], iteration_bounds = array<i64: 2, 1, 1>, scalar_prefetch = 0 : i64, scratch_operands = 0 : i64, tpu.core_type = #tpu.core_type<tc>, window_params = [{transform_indices = @transform_0, window_bounds = array<i64: 1, 4, 256>}, {transform_indices = @transform_1, window_bounds = array<i64: 8, 4>}, {transform_indices = @transform_2, window_bounds = array<i64: 8, 1>}, {transform_indices = @transform_3, window_bounds = array<i64: 1, 8, 256>}]} {
    %c0 = arith.constant 0 : index
    %c0_0 = arith.constant 0 : index
    %c0_1 = arith.constant 0 : index
    %0 = vector.load %arg3[%c0, %c0_0, %c0_1] : memref<1x4x256xf32, #tpu.memory_space<vmem>>, vector<1x4x256xf32>
    %1 = vector.shape_cast %0 : vector<1x4x256xf32> to vector<4x256xf32>
    %c0_2 = arith.constant 0 : index
    %c0_3 = arith.constant 0 : index
    %2 = vector.load %arg4[%c0_2, %c0_3] : memref<8x4xf32, #tpu.memory_space<vmem>>, vector<8x4xf32>
    %3 = vector.extract_strided_slice %2 {offsets = [0, 0], sizes = [8, 1], strides = [1, 1]} : vector<8x4xf32> to vector<8x1xf32>
    %4 = vector.extract_strided_slice %1 {offsets = [0, 0], sizes = [1, 256], strides = [1, 1]} : vector<4x256xf32> to vector<1x256xf32>
    %5 = vector.broadcast %3 : vector<8x1xf32> to vector<8x256xf32>
    %6 = vector.broadcast %4 : vector<1x256xf32> to vector<8x256xf32>
    %7 = arith.mulf %5, %6 : vector<8x256xf32>
    %8 = vector.extract_strided_slice %2 {offsets = [0, 1], sizes = [8, 1], strides = [1, 1]} : vector<8x4xf32> to vector<8x1xf32>
    %9 = vector.extract_strided_slice %1 {offsets = [1, 0], sizes = [1, 256], strides = [1, 1]} : vector<4x256xf32> to vector<1x256xf32>
    %10 = vector.broadcast %8 : vector<8x1xf32> to vector<8x256xf32>
    %11 = vector.broadcast %9 : vector<1x256xf32> to vector<8x256xf32>
    %12 = arith.mulf %10, %11 : vector<8x256xf32>
    %13 = arith.addf %7, %12 : vector<8x256xf32>
    %14 = vector.extract_strided_slice %2 {offsets = [0, 2], sizes = [8, 1], strides = [1, 1]} : vector<8x4xf32> to vector<8x1xf32>
    %15 = vector.extract_strided_slice %1 {offsets = [2, 0], sizes = [1, 256], strides = [1, 1]} : vector<4x256xf32> to vector<1x256xf32>
    %16 = vector.broadcast %14 : vector<8x1xf32> to vector<8x256xf32>
    %17 = vector.broadcast %15 : vector<1x256xf32> to vector<8x256xf32>
    %18 = arith.mulf %16, %17 : vector<8x256xf32>
    %19 = arith.addf %13, %18 : vector<8x256xf32>
    %20 = vector.extract_strided_slice %2 {offsets = [0, 3], sizes = [8, 1], strides = [1, 1]} : vector<8x4xf32> to vector<8x1xf32>
    %21 = vector.extract_strided_slice %1 {offsets = [3, 0], sizes = [1, 256], strides = [1, 1]} : vector<4x256xf32> to vector<1x256xf32>
    %22 = vector.broadcast %20 : vector<8x1xf32> to vector<8x256xf32>
    %23 = vector.broadcast %21 : vector<1x256xf32> to vector<8x256xf32>
    %24 = arith.mulf %22, %23 : vector<8x256xf32>
    %25 = arith.addf %19, %24 : vector<8x256xf32>
    %c0_4 = arith.constant 0 : index
    %c0_5 = arith.constant 0 : index
    %26 = vector.load %arg5[%c0_4, %c0_5] : memref<8x1xf32, #tpu.memory_space<vmem>>, vector<8x1xf32>
    %27 = vector.broadcast %26 : vector<8x1xf32> to vector<8x256xf32>
    %28 = arith.addf %25, %27 : vector<8x256xf32>
    %c0_6 = arith.constant 0 : index
    %c0_7 = arith.constant 0 : index
    %c0_8 = arith.constant 0 : index
    %29 = vector.load %arg6[%c0_6, %c0_7, %c0_8] : memref<1x8x256xf32, #tpu.memory_space<vmem>>, vector<1x8x256xf32>
    %30 = vector.shape_cast %29 : vector<1x8x256xf32> to vector<8x256xf32>
    %31 = vector.shape_cast %28 : vector<8x256xf32> to vector<1x8x256xf32>
    tpu.vector_store %arg6[%c0_6, %c0_7, %c0_8], %31 {strides = array<i32>} : memref<1x8x256xf32, #tpu.memory_space<vmem>>, vector<1x8x256xf32>,
    return
  }
  func.func @transform_0(%arg0: i32, %arg1: i32, %arg2: i32) -> (i32, i32, i32) {
    %c0_i32 = arith.constant 0 : i32
    %c0_i32_0 = arith.constant 0 : i32
    return %arg0, %c0_i32, %arg2 : i32, i32, i32
  }
  func.func @transform_1(%arg0: i32, %arg1: i32, %arg2: i32) -> (i32, i32) {
    %c0_i32 = arith.constant 0 : i32
    %c0_i32_0 = arith.constant 0 : i32
    return %arg1, %c0_i32 : i32, i32
  }
  func.func @transform_2(%arg0: i32, %arg1: i32, %arg2: i32) -> (i32, i32) {
    %c0_i32 = arith.constant 0 : i32
    %c0_i32_0 = arith.constant 0 : i32
    return %arg1, %c0_i32 : i32, i32
  }
  func.func @transform_3(%arg0: i32, %arg1: i32, %arg2: i32) -> (i32, i32, i32) {
    %c0_i32 = arith.constant 0 : i32
    return %arg0, %arg1, %arg2 : i32, i32, i32
  }
}

</mosaic_0001>

<bundles_post_ra>
// kernel: tpu_custom_call.1
= control target key start
LH: loop header
LB: loop body
LE: loop exit
PB: predicated region body
PF: predicated region fallthrough
CT: control target
= control target key end

     0   :  { %8 = vsyncpa [#allocation3], 0  ;;  %s736_s0 = inlined_call_operand.vmem [shape: f32[2,4,256], index: 0, kind: input, shape index: {}]   ;;  %s737_s1 = inlined_call_operand.vmem [shape: f32[8,4], index: 1, kind: input, shape index: {}]   ;;  %s738_s2 = inlined_call_operand.vmem [shape: f32[8,1], index: 2, kind: input, shape index: {}]   ;;  %s739_s3 = inlined_call_operand.hbm [shape: f32[2,8,256], index: 3, kind: output, shape index: {}]  }
   0x1   :  { %10 = vsyncpa [#allocation3 + $0x1], 0  ;;  %s629_s12 = smov 0   ;;  %s631_s13 = smov 0  }
   0x2   :  { %s633_s14 = smov 0   ;;  %s635_s15 = smov 0  }
   0x3   :  { %s637_s16 = smov 0   ;;  %s639_s17 = smov 0  }
   0x4 LB: > { %s443_s18 = sadd.s32 4294967295, %s603_s17   ;;  %s444_s19 = sadd.s32 4294967294, %s603_s17   ;;  %s603_s17 = sphi %s639_s17, %s16_s17   ;;  %s599_s16 = sphi %s637_s16, %s746_s16   ;;  %s595_s15 = sphi %s635_s15, %s745_s15   ;;  %s591_s14 = sphi %s633_s14, %s744_s14   ;;  %s587_s13 = sphi %s631_s13, %s743_s13   ;;  %s583_s12 = sphi %s629_s12, %s742_s12  }
   0x5   : > { %s35_s20 = sadd.s32 1, %s599_s16  ;;  %s126_s21 = sadd.s32 1, %s591_s14 }
   0x6   : > { %p37_p0 = scmp.ge.s32.totalorder %s35_s20, 2  ;;  %p136_p1 = scmp.ne.s32.totalorder %s591_s14, %s587_s13 }
   0x7   : > { %p137_p2 = scmp.eq.s32.totalorder %s443_s18, 1  ;;  %p142_p3 = scmp.ne.s32.totalorder %s587_s13, %s583_s12 }
   0x8   : > { %s748_s20 = smov (%p37_p0, %s35_s20), 0  ;;  %p143_p5 = scmp.eq.s32.totalorder %s444_s19, 1 }
   0x9   : > { %p669_p4 = por %p137_p2, %p136_p1  ;;  %s119_s23 = ssub.s32 %s599_s16, %s748_s20 }
   0xa   : > { %p449_p6 = scmp.ge.s32.totalorder %s603_s17, 1  ;;  %p124_p7 = scmp.eq.s32.totalorder %s119_s23, 0 }
   0xb   : > { %p676_p8 = por %p143_p5, %p142_p3  ;;  %p188_p9 = scmp.lt.s32.totalorder %s603_s17, 3 }
   0xc   : > { %s682_s25 = scalar_select %p124_p7, %s591_s14, %s126_s21  }
   0xd   : > { %p189_p10 = pnand %p449_p6, %p188_p9 }
   0xe   : > { %p225_p11 = scmp.lt.s32.totalorder (!%p189_p10), %s595_s15, 1  ;;  %s221_s8 = sand.u32 (!%p189_p10), 1, %s587_s13  }
   0xf   : > { %192 = sbr.rel (%p189_p10) target bundleno = 160 (0xa0), region = 32  ;;  %s450_s9 = sshll.u32 (!%p189_p10), %s221_s8, 4 }
  0x10   : > { %s459_s10 = sshll.u32 (!%p189_p10), %s595_s15, 4  ;;  %s223_s21 = scalar_lea.vmem (!%p189_p10), [#allocation2], %s450_s9 }
  0x11   : > { %s327_s19 = scalar_lea.hbm (!%p189_p10), %s739_s3, %s459_s10  ;;  %s329_s23 = sshll.u32 (!%p189_p10), %s223_s21, 4  ;;  %s330_s23 = int_to_ptr.vmem [resolvable:$true] %s329_s23 }
  0x12   : > { %s312_s26 = scalar_lea.sflag (!%p189_p10), [#allocation3], %s221_s8 }
  0x14   : > { %v244_v0 = vld [vmem:[%s737_s1] sm:$0xff]  ;;  %v605_v1 = vmov 0   ;;  %v606_v2 = vmov 2   ;;  %v607_v4 = vmov 1   ;;  %v608_v5 = vmov 3   ;;  %s226_s30 = scalar_select %p225_p11, %s595_s15, 1 }
  0x15   : > { %519 = vset.pattern.permute.xlu0 %v605_v1  ;;  %521 = vset.pattern.permute.xlu1 %v606_v2  ;;  %v301_v3 = vld [vmem:[%s738_s2] sm:$0xff]  ;;  %s331_s15 = sshll.u32 %s327_s19, 4  ;;  %s332_s15 = int_to_ptr.hbm [resolvable:$true] %s331_s15 }
  0x16   : > { %247 = vperm.xlu0 %519, %v244_v0   ;;  %274 = vperm.xlu1 %521, %v244_v0   ;;  %s458_s4 = sshll.u32 %s226_s30, 3  ;;  %s539_s27 = sshra.s32 %s332_s15, 4  ;;  %s540_s27 = int_to_ptr.hbm [resolvable:$true] %s539_s27 }
  0x17   : > { %523 = vset.pattern.permute.xlu2 %v605_v1  ;;  %s232_s7 = scalar_lea.vmem %s736_s0, %s458_s4  ;;  %s541_s28 = scalar_lea.hbm %s540_s27, 16 }
  0x18   : > { %304 = vperm.xlu2 %523, %v301_v3   ;;  %v243_v6 = vld [vmem:[%s232_s7] sm:$0xff]  ;;  %p542_p12 = scmp.ne.s32.totalorder %s540_s27, %s541_s28  ;;  %s545_s4 = scalar_lea.hbm %s739_s3, 32 }
  0x19   : > { %v251_v9 = vperm.slane %v243_v6, 0  ;;  %v252_v10 = vperm.slane %v243_v6, 4  ;;  %v263_v11 = vperm.slane %v243_v6, 1  ;;  %v264_v12 = vperm.slane %v243_v6, 5  ;;  %p546_p1 = scmp.lt.s32.totalorder %s540_s27, %s739_s3  ;;  %p547_p2 = scmp.lt.s32.totalorder %s545_s4, %s541_s28 }
  0x1a   : > { %v277_v13 = vperm.slane %v243_v6, 2  ;;  %v278_v14 = vperm.slane %v243_v6, 6  ;;  %v291_v15 = vperm.slane %v243_v6, 3  ;;  %v292_v16 = vperm.slane %v243_v6, 7  ;;  %p543_p13 = pnand %p542_p12, %p669_p4 }
  0x1b   : > { %v255_v17 = vperm.slane %v251_v9, 0  ;;  %v256_v18 = vperm.slane %v252_v10, 0  ;;  %v267_v19 = vperm.slane %v263_v11, 1  ;;  %v268_v20 = vperm.slane %v264_v12, 1  ;;  %p548_p3 = por %p547_p2, %p546_p1 }
  0x1c   : > { %v281_v21 = vperm.slane %v277_v13, 2  ;;  %v282_v22 = vperm.slane %v278_v14, 2  ;;  %v295_v23 = vperm.slane %v291_v15, 3  ;;  %v296_v24 = vperm.slane %v292_v16, 3  ;;  %p544_p0 = pneg %p543_p13 }
  0x1e   : > { %520 = vset.pattern.permute.xlu0 %v607_v4  ;;  %522 = vset.pattern.permute.xlu1 %v608_v5  ;;  %p549_p5 = pnand %p548_p3, %p544_p0 }
  0x1f   : > { %260 = vperm.xlu0 %520, %v244_v0   ;;  %288 = vperm.xlu1 %522, %v244_v0  }
  0x27   : > { %524 = vset.pattern.permute.xlu0 %v605_v1 }
  0x72   : > { %v305_v39 = vpop.permute.xlu2 %304 }
  0x88   : > { %v248_v7 = vpop.permute.xlu0 %247  ;;  %v275_v8 = vpop.permute.xlu1 %274 }
  0x89   : > { %v257_v27 = vmul.f32 %v255_v17, %v248_v7  ;;  %v258_v28 = vmul.f32 %v256_v18, %v248_v7  ;;  %v283_v31 = vmul.f32 %v281_v21, %v275_v8  ;;  %v284_v32 = vmul.f32 %v282_v22, %v275_v8 }
  0x91   : > { %v261_v25 = vpop.permute.xlu0 %260  ;;  %v289_v26 = vpop.permute.xlu1 %288 }
  0x92   : > { %v269_v29 = vmul.f32 %v267_v19, %v261_v25  ;;  %v270_v30 = vmul.f32 %v268_v20, %v261_v25  ;;  %v297_v35 = vmul.f32 %v295_v23, %v289_v26  ;;  %v298_v36 = vmul.f32 %v296_v24, %v289_v26 }
  0x94   : > { %v271_v33 = vadd.f32 %v269_v29, %v257_v27  ;;  %v272_v34 = vadd.f32 %v270_v30, %v258_v28 }
  0x96   : > { %v285_v37 = vadd.f32 %v283_v31, %v271_v33  ;;  %v286_v38 = vadd.f32 %v284_v32, %v272_v34 }
  0x98   : > { %v299_v40 = vadd.f32 %v297_v35, %v285_v37  ;;  %v300_v41 = vadd.f32 %v298_v36, %v286_v38 }
  0x9a   : > { %v307_v42 = vadd.f32 %v305_v39, %v299_v40  ;;  %v308_v43 = vadd.f32 %v305_v39, %v300_v41 }
  0x9c   : > { %309 = vst [vmem:[%s223_s21] sm:$0xff] %v307_v42 }
  0x9d   : > { %310 = vst [vmem:[%s223_s21 + $0x8] sm:$0xff] %v308_v43 }
  0x9e   : > { %552 = shalt.err (!%p549_p5)
}
  0x9f   : > { %460 = dma.vmem_to_hbm [thread:$0]  (%p669_p4), %s330_s23, 256, %s332_s15, %s312_s26  }
  0xa0 PF: > { %p466_p6 = scmp.ge.s32.totalorder %s603_s17, 2  ;;  %s343_s7 = sand.u32 1, %s583_s12  }
  0xa1   : > { %s344_s8 = scalar_lea.sflag [#allocation3], %s343_s7 }
  0xa2   : > { %p463_p7 = pnand %p466_p6, %p676_p8 }
  0xa4   : > { %p464_p9 = pneg %p463_p7 }
  0xa6   : > { %578 = dma.done.wait (%p464_p9), %s344_s8, 256  }
  0xa7   : > { %580 = vsyncadd (%p464_p9), %s344_s8, 4294967040  ;;  %s16_s17 = sadd.s32 1, %s603_s17   ;;  %s742_s12 = smov %s587_s13 }
  0xa8   : > { %p13_p10 = scmp.ge.s32.totalorder %s16_s17, 4   ;;  %s743_s13 = smov %s591_s14 }
  0xa9   : > { %s744_s14 = smov %s682_s25  ;;  %s745_s15 = smov %s599_s16 }
  0xaa   : > { %s746_s16 = smov %s748_s20  ;;  %15 = sbr.rel (!%p13_p10) target bundleno = 4 (0x4), region = 73 }
  0xaf   :  { %350 = vsyncpa [#allocation3], 1 }
  0xb0   :  { %352 = vsyncpa [#allocation3 + $0x1], 1 }

</bundles_post_ra>
